<compile_context>
chip_gen: v7x
topology: tpu7x:2x2x1
jax: 0.10.0
libtpu: 0.0.40
codegen_flags: <defaults>
</compile_context>

<pallas_src>
import functools
import math

import jax
import jax.numpy as jnp
from jax.experimental import pallas as pl
from jax.experimental.pallas import tpu as pltpu


# ------------------------------- kernel --------------------------------------


def _layernorm(x, gamma, beta, eps=1e-5):
    x = x.astype(jnp.float32)
    mean = jnp.mean(x, axis=-1, keepdims=True)
    xc = x - mean
    var = jnp.mean(xc * xc, axis=-1, keepdims=True)
    return xc * jax.lax.rsqrt(var + eps) * gamma + beta


def _self_attn_kernel(x_full_ref, x_q_ref, ln1_g_ref, ln1_b_ref,
                      wqkv_ref, bqkv_ref, wo_ref, bo_ref,
                      ln2_g_ref, ln2_b_ref,
                      o_ref, q_scr, k_scr, v_scr, *, nhead, block_q):
    _, S, E = x_full_ref.shape
    hd = E // nhead
    num_q = S // block_q
    f32 = jnp.float32
    qi = pl.program_id(1)

    # ---- once per batch (q-tile 0): LN1 + fused packed QKV -> VMEM scratch ----
    @pl.when(qi == 0)
    def _():
        g1 = ln1_g_ref[...].astype(f32)
        b1 = ln1_b_ref[...].astype(f32)
        h = _layernorm(x_full_ref[0].astype(f32), g1, b1)        # (S, E) f32
        h = h.astype(wqkv_ref.dtype)                             # MXU-native dtype
        qkv = jnp.dot(h, wqkv_ref[...],
                      preferred_element_type=f32)                # (S, 3E), f32 acc
        qkv = qkv + bqkv_ref[...].astype(f32)
        # Split the packed (head-major) lane columns into head-batched scratch.
        # Static slices / static leading-index stores only (done once per batch).
        for hh in range(nhead):
            k_scr[hh] = qkv[:, E + hh * hd:E + (hh + 1) * hd].astype(k_scr.dtype)
            v_scr[hh] = qkv[:, 2 * E + hh * hd:2 * E + (hh + 1) * hd].astype(v_scr.dtype)
            for t in range(num_q):
                q_scr[t, hh] = qkv[t * block_q:(t + 1) * block_q,
                                   hh * hd:(hh + 1) * hd].astype(q_scr.dtype)

    # ---- per q-tile: attention + out-proj + residual + LN2 ----
    q = q_scr[qi]                                                # (nhead, bq, hd); 1/sqrt(hd) pre-folded
    k = k_scr[...]                                               # (nhead, S, hd)
    v = v_scr[...]                                               # (nhead, S, hd)

    s = jnp.einsum('hqd,hkd->hqk', q, k,
                   preferred_element_type=f32)                   # (nhead, bq, S)
    s = s - jnp.max(s, axis=-1, keepdims=True)
    p = jnp.exp(s)
    denom = jnp.sum(p, axis=-1, keepdims=True)
    # EUP approximate reciprocal + one Newton step (~f32 accuracy, no VALU divide).
    inv = pl.reciprocal(denom, approx=True)
    inv = inv * (2.0 - denom * inv)
    p = p * inv

    ctx = jnp.einsum('hqk,hkd->hqd', p.astype(v.dtype), v,
                     preferred_element_type=f32)                 # (nhead, bq, hd)
    # Output projection: per-head partial products summed over heads
    # (== concat(heads) @ W_out.T, without any in-kernel concat/reshape).
    o_h = jnp.einsum('hqd,hde->hqe', ctx.astype(wo_ref.dtype), wo_ref[...],
                     preferred_element_type=f32)                 # (nhead, bq, E)
    attn = jnp.sum(o_h, axis=0) + bo_ref[...].astype(f32)        # (bq, E)

    y = x_q_ref[0].astype(f32) + attn                            # residual (dropout p=0)
    g2 = ln2_g_ref[...].astype(f32)
    b2 = ln2_b_ref[...].astype(f32)
    o_ref[0] = _layernorm(y, g2, b2).astype(o_ref.dtype)


# ------------------------------- wrapper --------------------------------------


def _pick_block_q(S, cap=256):
    """Whole sequence when it fits (one big MXU-M tile, zero recompute on
    single-TC chips); otherwise the largest multiple-of-8 divisor of S <= cap."""
    if S <= cap:
        return S
    for cand in range(cap, 7, -1):
        if S % cand == 0 and cand % 8 == 0:
            return cand
    return S


def _padded_bytes(shape, itemsize):
    lead = 1
    for d in shape[:-2]:
        lead *= int(d)
    r = -(-int(shape[-2]) // 8) * 8
    c = -(-int(shape[-1]) // 128) * 128
    return lead * r * c * itemsize


def _vmem_limit_bytes(S, E, nhead, block_q):
    hd = E // nhead
    num_q = S // block_q
    it = 4  # conservative: f32
    est = 0
    est += 2 * _padded_bytes((1, S, E), it)            # x full-seq block (x2 buffers)
    est += 2 * _padded_bytes((1, block_q, E), it)      # x q-tile block
    est += 2 * _padded_bytes((1, block_q, E), it)      # output block
    for shp in ((E, 3 * E), (1, 3 * E), (nhead, hd, E), (1, E),
                (1, E), (1, E), (1, E), (1, E)):       # weights / biases
        est += 2 * _padded_bytes(shp, it)
    est += _padded_bytes((num_q, nhead, block_q, hd), it)   # Q scratch
    est += 2 * _padded_bytes((nhead, S, hd), it)            # K, V scratch
    est = int(est * 1.25) + (4 << 20)                       # headroom for temporaries
    return max(32 << 20, min(64 << 20, est))


def self_attention_layer(x_sbe, params, nhead, block_q=None):
    """x_sbe: (S, B, E), same layout as the PyTorch module.  Returns (S, B, E)."""
    S, B, E = x_sbe.shape
    assert E % nhead == 0, "channels must be divisible by nhead"
    hd = E // nhead
    assert params["wqkv"].shape == (E, 3 * E)
    assert params["wo"].shape == (nhead, hd, E)

    if block_q is None:
        block_q = _pick_block_q(S)
    assert S % block_q == 0
    grid = (B, S // block_q)

    # One host-side transpose each way so B is NOT the sublane dim inside the
    # kernel (dense tiles, dense output stores).
    x_bse = jnp.transpose(x_sbe, (1, 0, 2))
    scratch_dtype = params["wqkv"].dtype
    num_q = S // block_q

    kernel = functools.partial(_self_attn_kernel, nhead=nhead, block_q=block_q)
    out_bse = pl.pallas_call(
        kernel,
        out_shape=jax.ShapeDtypeStruct((B, S, E), x_sbe.dtype),
        grid=grid,
        in_specs=[
            pl.BlockSpec((1, S, E), lambda b, i: (b, 0, 0)),       # x, full seq per batch
            pl.BlockSpec((1, block_q, E), lambda b, i: (b, i, 0)),  # x, q-tile (residual)
            pl.BlockSpec((1, E), lambda b, i: (0, 0)),              # ln1 gamma
            pl.BlockSpec((1, E), lambda b, i: (0, 0)),              # ln1 beta
            pl.BlockSpec((E, 3 * E), lambda b, i: (0, 0)),          # W_qkv packed, lane-dense
            pl.BlockSpec((1, 3 * E), lambda b, i: (0, 0)),          # b_qkv
            pl.BlockSpec((nhead, hd, E), lambda b, i: (0, 0, 0)),   # W_o per-head (lane = E)
            pl.BlockSpec((1, E), lambda b, i: (0, 0)),              # b_o
            pl.BlockSpec((1, E), lambda b, i: (0, 0)),              # ln2 gamma
            pl.BlockSpec((1, E), lambda b, i: (0, 0)),              # ln2 beta
        ],
        out_specs=pl.BlockSpec((1, block_q, E), lambda b, i: (b, i, 0)),
        scratch_shapes=[
            pltpu.VMEM((num_q, nhead, block_q, hd), scratch_dtype),  # Q (per-tile layout)
            pltpu.VMEM((nhead, S, hd), scratch_dtype),               # K
            pltpu.VMEM((nhead, S, hd), scratch_dtype),               # V
        ],
        compiler_params=pltpu.CompilerParams(
            dimension_semantics=("parallel", "arbitrary"),
            vmem_limit_bytes=_vmem_limit_bytes(S, E, nhead, block_q),
        ),
    )(x_bse, x_bse, params["ln1_g"], params["ln1_b"],
      params["wqkv"], params["bqkv"], params["wo"], params["bo"],
      params["ln2_g"], params["ln2_b"])
    return jnp.transpose(out_bse, (1, 0, 2))


def prepare_params(pt, nhead):
    """One-time host-side conversion of PyTorch-layout weights
    (in_proj_weight (3E,E), in_proj_bias (3E,), out_proj.weight (E,E),
    out_proj.bias (E,), LayerNorm (E,)) into the packed, lane-dense layout the
    kernel consumes.  1/sqrt(head_dim) is folded into the Q columns."""
    E = pt["out_proj_weight"].shape[0]
    hd = E // nhead
    scale = 1.0 / math.sqrt(hd)

    w_qkv = jnp.asarray(pt["in_proj_weight"]).T                    # (E, 3E)
    b_qkv = jnp.asarray(pt["in_proj_bias"]).reshape(1, 3 * E)
    col_scale = jnp.concatenate(
        [jnp.full((E,), scale, w_qkv.dtype), jnp.ones((2 * E,), w_qkv.dtype)])
    w_qkv = w_qkv * col_scale[None, :]
    b_qkv = (b_qkv * col_scale[None, :]).astype(w_qkv.dtype)

    wo = jnp.asarray(pt["out_proj_weight"]).T.reshape(nhead, hd, E)  # rows of W_out.T per head
    return {
        "ln1_g": jnp.asarray(pt["ln1_g"]).reshape(1, E),
        "ln1_b": jnp.asarray(pt["ln1_b"]).reshape(1, E),
        "ln2_g": jnp.asarray(pt["ln2_g"]).reshape(1, E),
        "ln2_b": jnp.asarray(pt["ln2_b"]).reshape(1, E),
        "wqkv": w_qkv, "bqkv": b_qkv,
        "wo": wo, "bo": jnp.asarray(pt["out_proj_bias"]).reshape(1, E),
    }


# --------------------------- reference (pure JAX) -----------------------------


def _reference(x_sbe, pt, nhead):
    S, B, E = x_sbe.shape
    hd = E // nhead
    x = x_sbe.astype(jnp.float32)

    def ln(t, g, b):
        m = jnp.mean(t, axis=-1, keepdims=True)
        v = jnp.mean((t - m) ** 2, axis=-1, keepdims=True)
        return (t - m) * jax.lax.rsqrt(v + 1e-5) * g + b

    h = ln(x, pt["ln1_g"], pt["ln1_b"])                            # (S, B, E)
    qkv = h @ pt["in_proj_weight"].T + pt["in_proj_bias"]          # (S, B, 3E)
    q, k, v = qkv[..., :E], qkv[..., E:2 * E], qkv[..., 2 * E:]
    q = q.reshape(S, B, nhead, hd) / math.sqrt(hd)
    k = k.reshape(S, B, nhead, hd)
    v = v.reshape(S, B, nhead, hd)
    p = jax.nn.softmax(jnp.einsum('qbhd,kbhd->bhqk', q, k), axis=-1)
    ctx = jnp.einsum('bhqk,kbhd->qbhd', p, v).reshape(S, B, E)
    o = ctx @ pt["out_proj_weight"].T + pt["out_proj_bias"]
    y = ln(x + o, pt["ln2_g"], pt["ln2_b"])
    return y.astype(x_sbe.dtype)


# --------------------------------- main ---------------------------------------


if __name__ == "__main__":
    S, B, E, NHEAD = 8, 2, 32, 4

    key = jax.random.PRNGKey(0)
    kx, kin, kbin, kwo, kbo = jax.random.split(key, 5)

    x = jax.random.normal(kx, (S, B, E), dtype=jnp.float32)

    pt_params = {
        # LayerNorm params (torch init: weight=1, bias=0)
        "ln1_g": jnp.ones((E,), jnp.float32), "ln1_b": jnp.zeros((E,), jnp.float32),
        "ln2_g": jnp.ones((E,), jnp.float32), "ln2_b": jnp.zeros((E,), jnp.float32),
        # nn.MultiheadAttention params in PyTorch layout
        "in_proj_weight": 0.1 * jax.random.normal(kin, (3 * E, E), jnp.float32),
        "in_proj_bias": 0.1 * jax.random.normal(kbin, (3 * E,), jnp.float32),
        "out_proj_weight": 0.1 * jax.random.normal(kwo, (E, E), jnp.float32),
        "out_proj_bias": 0.1 * jax.random.normal(kbo, (E,), jnp.float32),
    }
    params = prepare_params(pt_params, NHEAD)

    out = self_attention_layer(x, params, NHEAD)
    out = jax.block_until_ready(out)

    ref = _reference(x, pt_params, NHEAD)
    assert out.shape == (S, B, E)
    max_err = float(jnp.max(jnp.abs(out - ref)))
    # Tolerance leaves headroom for the EUP approx-reciprocal (+Newton) path.
    assert jnp.allclose(out, ref, atol=5e-4, rtol=5e-4), (
        f"mismatch vs pure-JAX reference (max abs err={max_err:.2e})")

    print("KERNEL_OK")
</pallas_src>

<mosaic_0001>
module attributes {stable_mosaic.version = 11 : i64} {
  func.func @_self_attn_kernel(%arg0: i32, %arg1: i32, %arg2: memref<1x8x32xf32, #tpu.memory_space<vmem>>, %arg3: memref<1x8x32xf32, #tpu.memory_space<vmem>>, %arg4: memref<1x32xf32, #tpu.memory_space<vmem>>, %arg5: memref<1x32xf32, #tpu.memory_space<vmem>>, %arg6: memref<32x96xf32, #tpu.memory_space<vmem>>, %arg7: memref<1x96xf32, #tpu.memory_space<vmem>>, %arg8: memref<4x8x32xf32, #tpu.memory_space<vmem>>, %arg9: memref<1x32xf32, #tpu.memory_space<vmem>>, %arg10: memref<1x32xf32, #tpu.memory_space<vmem>>, %arg11: memref<1x32xf32, #tpu.memory_space<vmem>>, %arg12: memref<1x8x32xf32, #tpu.memory_space<vmem>>, %arg13: memref<1x4x8x8xf32, #tpu.memory_space<vmem>>, %arg14: memref<4x8x8xf32, #tpu.memory_space<vmem>>, %arg15: memref<4x8x8xf32, #tpu.memory_space<vmem>>) attributes {dimension_semantics = [#tpu.dimension_semantics<parallel>, #tpu.dimension_semantics<arbitrary>], iteration_bounds = array<i64: 2, 1>, scalar_prefetch = 0 : i64, scratch_operands = 3 : i64, tpu.core_type = #tpu.core_type<tc>, window_params = [{transform_indices = @transform_0, window_bounds = array<i64: 1, 8, 32>}, {transform_indices = @transform_1, window_bounds = array<i64: 1, 8, 32>}, {pipeline_mode = #tpu.pipeline_mode<synchronous>, transform_indices = @transform_2, window_bounds = array<i64: 1, 32>}, {pipeline_mode = #tpu.pipeline_mode<synchronous>, transform_indices = @transform_3, window_bounds = array<i64: 1, 32>}, {pipeline_mode = #tpu.pipeline_mode<synchronous>, transform_indices = @transform_4, window_bounds = array<i64: 32, 96>}, {pipeline_mode = #tpu.pipeline_mode<synchronous>, transform_indices = @transform_5, window_bounds = array<i64: 1, 96>}, {pipeline_mode = #tpu.pipeline_mode<synchronous>, transform_indices = @transform_6, window_bounds = array<i64: 4, 8, 32>}, {pipeline_mode = #tpu.pipeline_mode<synchronous>, transform_indices = @transform_7, window_bounds = array<i64: 1, 32>}, {pipeline_mode = #tpu.pipeline_mode<synchronous>, transform_indices = @transform_8, window_bounds = array<i64: 1, 32>}, {pipeline_mode = #tpu.pipeline_mode<synchronous>, transform_indices = @transform_9, window_bounds = array<i64: 1, 32>}, {transform_indices = @transform_10, window_bounds = array<i64: 1, 8, 32>}]} {
    %c0_i32 = arith.constant 0 : i32
    %0 = arith.cmpi eq, %arg1, %c0_i32 : i32
    %1 = arith.extui %0 : i1 to i32
    %c0_i32_0 = arith.constant 0 : i32
    %2 = arith.cmpi ne, %1, %c0_i32_0 : i32
    scf.if %2 {
      %c0_35 = arith.constant 0 : index
      %c0_36 = arith.constant 0 : index
      %58 = vector.load %arg4[%c0_35, %c0_36] : memref<1x32xf32, #tpu.memory_space<vmem>>, vector<1x32xf32>
      %c0_37 = arith.constant 0 : index
      %c0_38 = arith.constant 0 : index
      %59 = vector.load %arg5[%c0_37, %c0_38] : memref<1x32xf32, #tpu.memory_space<vmem>>, vector<1x32xf32>
      %c0_39 = arith.constant 0 : index
      %c0_40 = arith.constant 0 : index
      %c0_41 = arith.constant 0 : index
      %60 = vector.load %arg2[%c0_39, %c0_40, %c0_41] : memref<1x8x32xf32, #tpu.memory_space<vmem>>, vector<1x8x32xf32>
      %61 = vector.shape_cast %60 : vector<1x8x32xf32> to vector<8x32xf32>
      %cst_42 = arith.constant dense<0.000000e+00> : vector<8xf32>
      %62 = vector.multi_reduction <add>, %61, %cst_42 [1] : vector<8x32xf32> to vector<8xf32>
      %63 = vector.shape_cast %62 : vector<8xf32> to vector<8x1xf32>
      %cst_43 = arith.constant 3.200000e+01 : f32
      %64 = vector.broadcast %cst_43 : f32 to vector<8x1xf32>
      %65 = arith.divf %63, %64 : vector<8x1xf32>
      %66 = vector.broadcast %65 : vector<8x1xf32> to vector<8x32xf32>
      %67 = arith.subf %61, %66 : vector<8x32xf32>
      %68 = arith.mulf %67, %67 : vector<8x32xf32>
      %cst_44 = arith.constant dense<0.000000e+00> : vector<8xf32>
      %69 = vector.multi_reduction <add>, %68, %cst_44 [1] : vector<8x32xf32> to vector<8xf32>
      %70 = vector.shape_cast %69 : vector<8xf32> to vector<8x1xf32>
      %cst_45 = arith.constant 3.200000e+01 : f32
      %71 = vector.broadcast %cst_45 : f32 to vector<8x1xf32>
      %72 = arith.divf %70, %71 : vector<8x1xf32>
      %cst_46 = arith.constant 9.99999974E-6 : f32
      %73 = vector.broadcast %cst_46 : f32 to vector<8x1xf32>
      %74 = arith.addf %72, %73 : vector<8x1xf32>
      %75 = math.rsqrt %74 : vector<8x1xf32>
      %76 = vector.broadcast %75 : vector<8x1xf32> to vector<8x32xf32>
      %77 = arith.mulf %67, %76 : vector<8x32xf32>
      %78 = vector.broadcast %58 : vector<1x32xf32> to vector<8x32xf32>
      %79 = arith.mulf %77, %78 : vector<8x32xf32>
      %80 = vector.broadcast %59 : vector<1x32xf32> to vector<8x32xf32>
      %81 = arith.addf %79, %80 : vector<8x32xf32>
      %c0_47 = arith.constant 0 : index
      %c0_48 = arith.constant 0 : index
      %82 = vector.load %arg6[%c0_47, %c0_48] : memref<32x96xf32, #tpu.memory_space<vmem>>, vector<32x96xf32>
      %cst_49 = arith.constant dense<0.000000e+00> : vector<8x96xf32>
      %83 = tpu.matmul %81, %82, %cst_49 {dimension_numbers = #tpu.dot_dimension_numbers<[1], [0], [0], [1], [0, 0, 1, 1], [], []>} : vector<8x32xf32>, vector<32x96xf32>, vector<8x96xf32> -> vector<8x96xf32>
      %c0_50 = arith.constant 0 : index
      %c0_51 = arith.constant 0 : index
      %84 = vector.load %arg7[%c0_50, %c0_51] : memref<1x96xf32, #tpu.memory_space<vmem>>, vector<1x96xf32>
      %85 = vector.broadcast %84 : vector<1x96xf32> to vector<8x96xf32>
      %86 = arith.addf %83, %85 : vector<8x96xf32>
      %87 = vector.extract_strided_slice %86 {offsets = [0, 32], sizes = [8, 8], strides = [1, 1]} : vector<8x96xf32> to vector<8x8xf32>
      %c0_52 = arith.constant 0 : index
      %c0_53 = arith.constant 0 : index
      %c0_54 = arith.constant 0 : index
      %88 = vector.load %arg14[%c0_52, %c0_53, %c0_54] : memref<4x8x8xf32, #tpu.memory_space<vmem>>, vector<1x8x8xf32>
      %89 = vector.shape_cast %88 : vector<1x8x8xf32> to vector<8x8xf32>
      %90 = vector.shape_cast %87 : vector<8x8xf32> to vector<1x8x8xf32>
      tpu.vector_store %arg14[%c0_52, %c0_53, %c0_54], %90 {strides = array<i32>} : memref<4x8x8xf32, #tpu.memory_space<vmem>>, vector<1x8x8xf32>,
      %91 = vector.extract_strided_slice %86 {offsets = [0, 64], sizes = [8, 8], strides = [1, 1]} : vector<8x96xf32> to vector<8x8xf32>
      %c0_55 = arith.constant 0 : index
      %c0_56 = arith.constant 0 : index
      %c0_57 = arith.constant 0 : index
      %92 = vector.load %arg15[%c0_55, %c0_56, %c0_57] : memref<4x8x8xf32, #tpu.memory_space<vmem>>, vector<1x8x8xf32>
      %93 = vector.shape_cast %92 : vector<1x8x8xf32> to vector<8x8xf32>
      %94 = vector.shape_cast %91 : vector<8x8xf32> to vector<1x8x8xf32>
      tpu.vector_store %arg15[%c0_55, %c0_56, %c0_57], %94 {strides = array<i32>} : memref<4x8x8xf32, #tpu.memory_space<vmem>>, vector<1x8x8xf32>,
      %95 = vector.extract_strided_slice %86 {offsets = [0, 0], sizes = [8, 8], strides = [1, 1]} : vector<8x96xf32> to vector<8x8xf32>
      %c0_58 = arith.constant 0 : index
      %c0_59 = arith.constant 0 : index
      %c0_60 = arith.constant 0 : index
      %c0_61 = arith.constant 0 : index
      %96 = vector.load %arg13[%c0_58, %c0_59, %c0_60, %c0_61] : memref<1x4x8x8xf32, #tpu.memory_space<vmem>>, vector<1x1x8x8xf32>
      %97 = vector.shape_cast %96 : vector<1x1x8x8xf32> to vector<8x8xf32>
      %98 = vector.shape_cast %95 : vector<8x8xf32> to vector<1x1x8x8xf32>
      tpu.vector_store %arg13[%c0_58, %c0_59, %c0_60, %c0_61], %98 {strides = array<i32>} : memref<1x4x8x8xf32, #tpu.memory_space<vmem>>, vector<1x1x8x8xf32>,
      %99 = vector.extract_strided_slice %86 {offsets = [0, 40], sizes = [8, 8], strides = [1, 1]} : vector<8x96xf32> to vector<8x8xf32>
      %c1 = arith.constant 1 : index
      %c0_62 = arith.constant 0 : index
      %c0_63 = arith.constant 0 : index
      %100 = vector.load %arg14[%c1, %c0_62, %c0_63] : memref<4x8x8xf32, #tpu.memory_space<vmem>>, vector<1x8x8xf32>
      %101 = vector.shape_cast %100 : vector<1x8x8xf32> to vector<8x8xf32>
      %102 = vector.shape_cast %99 : vector<8x8xf32> to vector<1x8x8xf32>
      tpu.vector_store %arg14[%c1, %c0_62, %c0_63], %102 {strides = array<i32>} : memref<4x8x8xf32, #tpu.memory_space<vmem>>, vector<1x8x8xf32>,
      %103 = vector.extract_strided_slice %86 {offsets = [0, 72], sizes = [8, 8], strides = [1, 1]} : vector<8x96xf32> to vector<8x8xf32>
      %c1_64 = arith.constant 1 : index
      %c0_65 = arith.constant 0 : index
      %c0_66 = arith.constant 0 : index
      %104 = vector.load %arg15[%c1_64, %c0_65, %c0_66] : memref<4x8x8xf32, #tpu.memory_space<vmem>>, vector<1x8x8xf32>
      %105 = vector.shape_cast %104 : vector<1x8x8xf32> to vector<8x8xf32>
      %106 = vector.shape_cast %103 : vector<8x8xf32> to vector<1x8x8xf32>
      tpu.vector_store %arg15[%c1_64, %c0_65, %c0_66], %106 {strides = array<i32>} : memref<4x8x8xf32, #tpu.memory_space<vmem>>, vector<1x8x8xf32>,
      %107 = vector.extract_strided_slice %86 {offsets = [0, 8], sizes = [8, 8], strides = [1, 1]} : vector<8x96xf32> to vector<8x8xf32>
      %c0_67 = arith.constant 0 : index
      %c1_68 = arith.constant 1 : index
      %c0_69 = arith.constant 0 : index
      %c0_70 = arith.constant 0 : index
      %108 = vector.load %arg13[%c0_67, %c1_68, %c0_69, %c0_70] : memref<1x4x8x8xf32, #tpu.memory_space<vmem>>, vector<1x1x8x8xf32>
      %109 = vector.shape_cast %108 : vector<1x1x8x8xf32> to vector<8x8xf32>
      %110 = vector.shape_cast %107 : vector<8x8xf32> to vector<1x1x8x8xf32>
      tpu.vector_store %arg13[%c0_67, %c1_68, %c0_69, %c0_70], %110 {strides = array<i32>} : memref<1x4x8x8xf32, #tpu.memory_space<vmem>>, vector<1x1x8x8xf32>,
      %111 = vector.extract_strided_slice %86 {offsets = [0, 48], sizes = [8, 8], strides = [1, 1]} : vector<8x96xf32> to vector<8x8xf32>
      %c2 = arith.constant 2 : index
      %c0_71 = arith.constant 0 : index
      %c0_72 = arith.constant 0 : index
      %112 = vector.load %arg14[%c2, %c0_71, %c0_72] : memref<4x8x8xf32, #tpu.memory_space<vmem>>, vector<1x8x8xf32>
      %113 = vector.shape_cast %112 : vector<1x8x8xf32> to vector<8x8xf32>
      %114 = vector.shape_cast %111 : vector<8x8xf32> to vector<1x8x8xf32>
      tpu.vector_store %arg14[%c2, %c0_71, %c0_72], %114 {strides = array<i32>} : memref<4x8x8xf32, #tpu.memory_space<vmem>>, vector<1x8x8xf32>,
      %115 = vector.extract_strided_slice %86 {offsets = [0, 80], sizes = [8, 8], strides = [1, 1]} : vector<8x96xf32> to vector<8x8xf32>
      %c2_73 = arith.constant 2 : index
      %c0_74 = arith.constant 0 : index
      %c0_75 = arith.constant 0 : index
      %116 = vector.load %arg15[%c2_73, %c0_74, %c0_75] : memref<4x8x8xf32, #tpu.memory_space<vmem>>, vector<1x8x8xf32>
      %117 = vector.shape_cast %116 : vector<1x8x8xf32> to vector<8x8xf32>
      %118 = vector.shape_cast %115 : vector<8x8xf32> to vector<1x8x8xf32>
      tpu.vector_store %arg15[%c2_73, %c0_74, %c0_75], %118 {strides = array<i32>} : memref<4x8x8xf32, #tpu.memory_space<vmem>>, vector<1x8x8xf32>,
      %119 = vector.extract_strided_slice %86 {offsets = [0, 16], sizes = [8, 8], strides = [1, 1]} : vector<8x96xf32> to vector<8x8xf32>
      %c0_76 = arith.constant 0 : index
      %c2_77 = arith.constant 2 : index
      %c0_78 = arith.constant 0 : index
      %c0_79 = arith.constant 0 : index
      %120 = vector.load %arg13[%c0_76, %c2_77, %c0_78, %c0_79] : memref<1x4x8x8xf32, #tpu.memory_space<vmem>>, vector<1x1x8x8xf32>
      %121 = vector.shape_cast %120 : vector<1x1x8x8xf32> to vector<8x8xf32>
      %122 = vector.shape_cast %119 : vector<8x8xf32> to vector<1x1x8x8xf32>
      tpu.vector_store %arg13[%c0_76, %c2_77, %c0_78, %c0_79], %122 {strides = array<i32>} : memref<1x4x8x8xf32, #tpu.memory_space<vmem>>, vector<1x1x8x8xf32>,
      %123 = vector.extract_strided_slice %86 {offsets = [0, 56], sizes = [8, 8], strides = [1, 1]} : vector<8x96xf32> to vector<8x8xf32>
      %c3 = arith.constant 3 : index
      %c0_80 = arith.constant 0 : index
      %c0_81 = arith.constant 0 : index
      %124 = vector.load %arg14[%c3, %c0_80, %c0_81] : memref<4x8x8xf32, #tpu.memory_space<vmem>>, vector<1x8x8xf32>
      %125 = vector.shape_cast %124 : vector<1x8x8xf32> to vector<8x8xf32>
      %126 = vector.shape_cast %123 : vector<8x8xf32> to vector<1x8x8xf32>
      tpu.vector_store %arg14[%c3, %c0_80, %c0_81], %126 {strides = array<i32>} : memref<4x8x8xf32, #tpu.memory_space<vmem>>, vector<1x8x8xf32>,
      %127 = vector.extract_strided_slice %86 {offsets = [0, 88], sizes = [8, 8], strides = [1, 1]} : vector<8x96xf32> to vector<8x8xf32>
      %c3_82 = arith.constant 3 : index
      %c0_83 = arith.constant 0 : index
      %c0_84 = arith.constant 0 : index
      %128 = vector.load %arg15[%c3_82, %c0_83, %c0_84] : memref<4x8x8xf32, #tpu.memory_space<vmem>>, vector<1x8x8xf32>
      %129 = vector.shape_cast %128 : vector<1x8x8xf32> to vector<8x8xf32>
      %130 = vector.shape_cast %127 : vector<8x8xf32> to vector<1x8x8xf32>
      tpu.vector_store %arg15[%c3_82, %c0_83, %c0_84], %130 {strides = array<i32>} : memref<4x8x8xf32, #tpu.memory_space<vmem>>, vector<1x8x8xf32>,
      %131 = vector.extract_strided_slice %86 {offsets = [0, 24], sizes = [8, 8], strides = [1, 1]} : vector<8x96xf32> to vector<8x8xf32>
      %c0_85 = arith.constant 0 : index
      %c3_86 = arith.constant 3 : index
      %c0_87 = arith.constant 0 : index
      %c0_88 = arith.constant 0 : index
      %132 = vector.load %arg13[%c0_85, %c3_86, %c0_87, %c0_88] : memref<1x4x8x8xf32, #tpu.memory_space<vmem>>, vector<1x1x8x8xf32>
      %133 = vector.shape_cast %132 : vector<1x1x8x8xf32> to vector<8x8xf32>
      %134 = vector.shape_cast %131 : vector<8x8xf32> to vector<1x1x8x8xf32>
      tpu.vector_store %arg13[%c0_85, %c3_86, %c0_87, %c0_88], %134 {strides = array<i32>} : memref<1x4x8x8xf32, #tpu.memory_space<vmem>>, vector<1x1x8x8xf32>,
    } else {
    }
    %3 = arith.index_cast %arg1 : i32 to index
    %c0 = arith.constant 0 : index
    %c0_1 = arith.constant 0 : index
    %c0_2 = arith.constant 0 : index
    %4 = vector.load %arg13[%3, %c0, %c0_1, %c0_2] : memref<1x4x8x8xf32, #tpu.memory_space<vmem>>, vector<1x4x8x8xf32>
    %5 = vector.shape_cast %4 : vector<1x4x8x8xf32> to vector<4x8x8xf32>
    %c0_3 = arith.constant 0 : index
    %c0_4 = arith.constant 0 : index
    %c0_5 = arith.constant 0 : index
    %6 = vector.load %arg14[%c0_3, %c0_4, %c0_5] : memref<4x8x8xf32, #tpu.memory_space<vmem>>, vector<4x8x8xf32>
    %c0_6 = arith.constant 0 : index
    %c0_7 = arith.constant 0 : index
    %c0_8 = arith.constant 0 : index
    %7 = vector.load %arg15[%c0_6, %c0_7, %c0_8] : memref<4x8x8xf32, #tpu.memory_space<vmem>>, vector<4x8x8xf32>
    "tpu.trace_start"() <{level = 10 : i32, message = "hqd,hkd->hqk"}> : () -> ()
    %cst = arith.constant dense<0.000000e+00> : vector<4x8x8xf32>
    %8 = tpu.matmul %5, %6, %cst {dimension_numbers = #tpu.dot_dimension_numbers<[2], [2], [1], [1], [0, 0, 0, 1, 1, 1], [0], [0]>} : vector<4x8x8xf32>, vector<4x8x8xf32>, vector<4x8x8xf32> -> vector<4x8x8xf32>
    "tpu.trace_stop"() : () -> ()
    %cst_9 = arith.constant dense<0xFF800000> : vector<4x8xf32>
    %9 = vector.multi_reduction <maximumf>, %8, %cst_9 [2] : vector<4x8x8xf32> to vector<4x8xf32>
    %10 = vector.shape_cast %9 : vector<4x8xf32> to vector<4x8x1xf32>
    %11 = vector.broadcast %10 : vector<4x8x1xf32> to vector<4x8x8xf32>
    %12 = arith.subf %8, %11 : vector<4x8x8xf32>
    %13 = math.exp %12 : vector<4x8x8xf32>
    %cst_10 = arith.constant dense<0.000000e+00> : vector<4x8xf32>
    %14 = vector.multi_reduction <add>, %13, %cst_10 [2] : vector<4x8x8xf32> to vector<4x8xf32>
    %15 = vector.shape_cast %14 : vector<4x8xf32> to vector<4x8x1xf32>
    %16 = tpu.reciprocal %15 {approx = true} : vector<4x8x1xf32> -> vector<4x8x1xf32>
    %17 = arith.mulf %15, %16 : vector<4x8x1xf32>
    %cst_11 = arith.constant 2.000000e+00 : f32
    %18 = vector.broadcast %cst_11 : f32 to vector<4x8x1xf32>
    %19 = arith.subf %18, %17 : vector<4x8x1xf32>
    %20 = arith.mulf %16, %19 : vector<4x8x1xf32>
    %21 = vector.broadcast %20 : vector<4x8x1xf32> to vector<4x8x8xf32>
    %22 = arith.mulf %13, %21 : vector<4x8x8xf32>
    "tpu.trace_start"() <{level = 10 : i32, message = "hqk,hkd->hqd"}> : () -> ()
    %cst_12 = arith.constant dense<0.000000e+00> : vector<4x8x8xf32>
    %23 = tpu.matmul %22, %7, %cst_12 {dimension_numbers = #tpu.dot_dimension_numbers<[2], [1], [1], [2], [0, 0, 0, 1, 1, 2], [0], [0]>} : vector<4x8x8xf32>, vector<4x8x8xf32>, vector<4x8x8xf32> -> vector<4x8x8xf32>
    "tpu.trace_stop"() : () -> ()
    %c0_13 = arith.constant 0 : index
    %c0_14 = arith.constant 0 : index
    %c0_15 = arith.constant 0 : index
    %24 = vector.load %arg8[%c0_13, %c0_14, %c0_15] : memref<4x8x32xf32, #tpu.memory_space<vmem>>, vector<4x8x32xf32>
    "tpu.trace_start"() <{level = 10 : i32, message = "hqd,hde->hqe"}> : () -> ()
    %cst_16 = arith.constant dense<0.000000e+00> : vector<4x8x32xf32>
    %25 = tpu.matmul %23, %24, %cst_16 {dimension_numbers = #tpu.dot_dimension_numbers<[2], [1], [1], [2], [0, 0, 0, 1, 1, 2], [0], [0]>} : vector<4x8x8xf32>, vector<4x8x32xf32>, vector<4x8x32xf32> -> vector<4x8x32xf32>
    "tpu.trace_stop"() : () -> ()
    %cst_17 = arith.constant dense<0.000000e+00> : vector<8x32xf32>
    %26 = vector.multi_reduction <add>, %25, %cst_17 [0] : vector<4x8x32xf32> to vector<8x32xf32>
    %c0_18 = arith.constant 0 : index
    %c0_19 = arith.constant 0 : index
    %27 = vector.load %arg9[%c0_18, %c0_19] : memref<1x32xf32, #tpu.memory_space<vmem>>, vector<1x32xf32>
    %28 = vector.broadcast %27 : vector<1x32xf32> to vector<8x32xf32>
    %29 = arith.addf %26, %28 : vector<8x32xf32>
    %c0_20 = arith.constant 0 : index
    %c0_21 = arith.constant 0 : index
    %c0_22 = arith.constant 0 : index
    %30 = vector.load %arg3[%c0_20, %c0_21, %c0_22] : memref<1x8x32xf32, #tpu.memory_space<vmem>>, vector<1x8x32xf32>
    %31 = vector.shape_cast %30 : vector<1x8x32xf32> to vector<8x32xf32>
    %32 = arith.addf %31, %29 : vector<8x32xf32>
    %c0_23 = arith.constant 0 : index
    %c0_24 = arith.constant 0 : index
    %33 = vector.load %arg10[%c0_23, %c0_24] : memref<1x32xf32, #tpu.memory_space<vmem>>, vector<1x32xf32>
    %c0_25 = arith.constant 0 : index
    %c0_26 = arith.constant 0 : index
    %34 = vector.load %arg11[%c0_25, %c0_26] : memref<1x32xf32, #tpu.memory_space<vmem>>, vector<1x32xf32>
    %cst_27 = arith.constant dense<0.000000e+00> : vector<8xf32>
    %35 = vector.multi_reduction <add>, %32, %cst_27 [1] : vector<8x32xf32> to vector<8xf32>
    %36 = vector.shape_cast %35 : vector<8xf32> to vector<8x1xf32>
    %cst_28 = arith.constant 3.200000e+01 : f32
    %37 = vector.broadcast %cst_28 : f32 to vector<8x1xf32>
    %38 = arith.divf %36, %37 : vector<8x1xf32>
    %39 = vector.broadcast %38 : vector<8x1xf32> to vector<8x32xf32>
    %40 = arith.subf %32, %39 : vector<8x32xf32>
    %41 = arith.mulf %40, %40 : vector<8x32xf32>
    %cst_29 = arith.constant dense<0.000000e+00> : vector<8xf32>
    %42 = vector.multi_reduction <add>, %41, %cst_29 [1] : vector<8x32xf32> to vector<8xf32>
    %43 = vector.shape_cast %42 : vector<8xf32> to vector<8x1xf32>
    %cst_30 = arith.constant 3.200000e+01 : f32
    %44 = vector.broadcast %cst_30 : f32 to vector<8x1xf32>
    %45 = arith.divf %43, %44 : vector<8x1xf32>
    %cst_31 = arith.constant 9.99999974E-6 : f32
    %46 = vector.broadcast %cst_31 : f32 to vector<8x1xf32>
    %47 = arith.addf %45, %46 : vector<8x1xf32>
    %48 = math.rsqrt %47 : vector<8x1xf32>
    %49 = vector.broadcast %48 : vector<8x1xf32> to vector<8x32xf32>
    %50 = arith.mulf %40, %49 : vector<8x32xf32>
    %51 = vector.broadcast %33 : vector<1x32xf32> to vector<8x32xf32>
    %52 = arith.mulf %50, %51 : vector<8x32xf32>
    %53 = vector.broadcast %34 : vector<1x32xf32> to vector<8x32xf32>
    %54 = arith.addf %52, %53 : vector<8x32xf32>
    %c0_32 = arith.constant 0 : index
    %c0_33 = arith.constant 0 : index
    %c0_34 = arith.constant 0 : index
    %55 = vector.load %arg12[%c0_32, %c0_33, %c0_34] : memref<1x8x32xf32, #tpu.memory_space<vmem>>, vector<1x8x32xf32>
    %56 = vector.shape_cast %55 : vector<1x8x32xf32> to vector<8x32xf32>
    %57 = vector.shape_cast %54 : vector<8x32xf32> to vector<1x8x32xf32>
    tpu.vector_store %arg12[%c0_32, %c0_33, %c0_34], %57 {strides = array<i32>} : memref<1x8x32xf32, #tpu.memory_space<vmem>>, vector<1x8x32xf32>,
    return
  }
  func.func @transform_0(%arg0: i32, %arg1: i32) -> (i32, i32, i32) {
    %c0_i32 = arith.constant 0 : i32
    %c0_i32_0 = arith.constant 0 : i32
    %c0_i32_1 = arith.constant 0 : i32
    return %arg0, %c0_i32, %c0_i32_0 : i32, i32, i32
  }
  func.func @transform_1(%arg0: i32, %arg1: i32) -> (i32, i32, i32) {
    %c0_i32 = arith.constant 0 : i32
    %c0_i32_0 = arith.constant 0 : i32
    return %arg0, %arg1, %c0_i32 : i32, i32, i32
  }
  func.func @transform_2(%arg0: i32, %arg1: i32) -> (i32, i32) {
    %c0_i32 = arith.constant 0 : i32
    %c0_i32_0 = arith.constant 0 : i32
    %c0_i32_1 = arith.constant 0 : i32
    return %c0_i32, %c0_i32_0 : i32, i32
  }
  func.func @transform_3(%arg0: i32, %arg1: i32) -> (i32, i32) {
    %c0_i32 = arith.constant 0 : i32
    %c0_i32_0 = arith.constant 0 : i32
    %c0_i32_1 = arith.constant 0 : i32
    return %c0_i32, %c0_i32_0 : i32, i32
  }
  func.func @transform_4(%arg0: i32, %arg1: i32) -> (i32, i32) {
    %c0_i32 = arith.constant 0 : i32
    %c0_i32_0 = arith.constant 0 : i32
    %c0_i32_1 = arith.constant 0 : i32
    return %c0_i32, %c0_i32_0 : i32, i32
  }
  func.func @transform_5(%arg0: i32, %arg1: i32) -> (i32, i32) {
    %c0_i32 = arith.constant 0 : i32
    %c0_i32_0 = arith.constant 0 : i32
    %c0_i32_1 = arith.constant 0 : i32
    return %c0_i32, %c0_i32_0 : i32, i32
  }
  func.func @transform_6(%arg0: i32, %arg1: i32) -> (i32, i32, i32) {
    %c0_i32 = arith.constant 0 : i32
    %c0_i32_0 = arith.constant 0 : i32
    %c0_i32_1 = arith.constant 0 : i32
    %c0_i32_2 = arith.constant 0 : i32
    return %c0_i32, %c0_i32_0, %c0_i32_1 : i32, i32, i32
  }
  func.func @transform_7(%arg0: i32, %arg1: i32) -> (i32, i32) {
    %c0_i32 = arith.constant 0 : i32
    %c0_i32_0 = arith.constant 0 : i32
    %c0_i32_1 = arith.constant 0 : i32
    return %c0_i32, %c0_i32_0 : i32, i32
  }
  func.func @transform_8(%arg0: i32, %arg1: i32) -> (i32, i32) {
    %c0_i32 = arith.constant 0 : i32
    %c0_i32_0 = arith.constant 0 : i32
    %c0_i32_1 = arith.constant 0 : i32
    return %c0_i32, %c0_i32_0 : i32, i32
  }
  func.func @transform_9(%arg0: i32, %arg1: i32) -> (i32, i32) {
    %c0_i32 = arith.constant 0 : i32
    %c0_i32_0 = arith.constant 0 : i32
    %c0_i32_1 = arith.constant 0 : i32
    return %c0_i32, %c0_i32_0 : i32, i32
  }
  func.func @transform_10(%arg0: i32, %arg1: i32) -> (i32, i32, i32) {
    %c0_i32 = arith.constant 0 : i32
    %c0_i32_0 = arith.constant 0 : i32
    return %arg0, %arg1, %c0_i32 : i32, i32, i32
  }
}

</mosaic_0001>

<bundles_post_ra>
// kernel: tpu_custom_call.1
= control target key start
LH: loop header
LB: loop body
LE: loop exit
PB: predicated region body
PF: predicated region fallthrough
CT: control target
= control target key end

     0   :  { %s2753_s0 = inlined_call_operand.hbm [shape: f32[2,8,32], index: 0, kind: input, shape index: {}]   ;;  %s2754_s1 = inlined_call_operand.hbm [shape: f32[2,8,32], index: 1, kind: input, shape index: {}]   ;;  %s2755_s2 = inlined_call_operand.vmem [shape: f32[1,32], index: 2, kind: input, shape index: {}]   ;;  %s2756_s3 = inlined_call_operand.vmem [shape: f32[1,32], index: 3, kind: input, shape index: {}]   ;;  %s2757_s4 = inlined_call_operand.hbm [shape: f32[32,96], index: 4, kind: input, shape index: {}]   ;;  %s2758_s5 = inlined_call_operand.vmem [shape: f32[1,96], index: 5, kind: input, shape index: {}]   ;;  %s2759_s6 = inlined_call_operand.hbm [shape: f32[4,8,32], index: 6, kind: input, shape index: {}]   ;;  %s2760_s7 = inlined_call_operand.vmem [shape: f32[1,32], index: 7, kind: input, shape index: {}]   ;;  %s2761_s8 = inlined_call_operand.vmem [shape: f32[1,32], index: 8, kind: input, shape index: {}]   ;;  %s2762_s9 = inlined_call_operand.vmem [shape: f32[1,32], index: 9, kind: input, shape index: {}]   ;;  %s2763_s10 = inlined_call_operand.hbm [shape: f32[2,8,32], index: 10, kind: output, shape index: {}]  }
   0x1   :  { %2773 = sst [smem:[#allocation24_spill]] %s2757_s4 }
   0x2   :  { %2774 = sst [smem:[#allocation25_spill]] %s2759_s6 }
   0x3   :  { %2775 = sst [smem:[#allocation26_spill]] %s2762_s9 }
   0x4   :  { %2776 = sst [smem:[#allocation27_spill]] %s2763_s10 }
   0x5   :  { %15 = vsyncpa [#allocation6], 0 }
   0x6   :  { %17 = vsyncpa [#allocation6 + $0x1], 0 }
   0x7   :  { %18 = vsyncpa [#allocation9], 0 }
   0x8   :  { %20 = vsyncpa [#allocation9 + $0x1], 0 }
   0x9   :  { %21 = vsyncpa [#allocation12], 0 }
   0xa   :  { %22 = vsyncpa [#allocation7], 0 }
   0xb   :  { %24 = vsyncpa [#allocation7 + $0x1], 0  ;;  %s2346_s13 = smov 0   ;;  %s2348_s14 = smov 0  }
   0xc   :  { %s2350_s15 = smov 0   ;;  %s2352_s16 = smov 0  }
   0xd   :  { %s2354_s17 = smov 0   ;;  %s2356_s18 = smov 0  }
   0xe LB: > { %2777 = sst [smem:[#allocation19_spill]] %s2248_s13  ;;  %s2377_s19 = sadd.s32 4294967295, %s2268_s18   ;;  %s2268_s18 = sphi %s2356_s18, %s30_s18   ;;  %s2264_s17 = sphi %s2354_s17, %s2806_s17   ;;  %s2260_s16 = sphi %s2352_s16, %s2805_s16   ;;  %s2256_s15 = sphi %s2350_s15, %s2809_s15   ;;  %s2252_s14 = sphi %s2348_s14, %s2808_s14   ;;  %s2248_s13 = sphi %s2346_s13, %s2807_s13  }
   0xf   : > { %2778 = sst [smem:[#allocation20_spill]] %s2264_s17  ;;  %s1786_s20 = sadd.s32 4294967294, %s2268_s18  }
  0x10   : > { %p62_p0 = scmp.ne.s32.totalorder %s2252_s14, %s2248_s13  ;;  %p2765_p1 = scmp.eq.s32.totalorder %s2377_s19, 0 }
  0x11   : > { %p290_p3 = scmp.eq.s32.totalorder %s1786_s20, 1  ;;  %p1787_p5 = scmp.ge.s32.totalorder %s2268_s18, 1 }
  0x12   : > { %p2386_p4 = por %p2765_p1, %p62_p0  ;;  %p297_p7 = scmp.lt.s32.totalorder %s2268_s18, 3 }
  0x13   : > { %p2391_p6 = por %p290_p3, %p62_p0  ;;  %s2270_s24 = smov [#allocation10]  }
  0x14   : > { %s2779_s21 = scalar_select %p2386_p4, 1, 0 }
  0x15   : > { %s2780_s22 = scalar_select %p2391_p6, 1, 0 }
  0x16   : > { %p2396_p8 = pnand %p1787_p5, %p297_p7  ;;  %s315_s25 = sshll.u32 %s2270_s24, 4  ;;  %s2400_s25 = int_to_ptr.vmem [resolvable:$true] %s315_s25 }
  0x17   : > { %2781 = sst [smem:[#allocation21_spill]] %s2780_s22  ;;  %s2271_s27 = smov [#allocation11]  }
  0x18   : > { %s2782_s23 = scalar_select %p2396_p8, 1, 0 }
  0x19   : > { %p1948_p9 = pneg %p2396_p8  ;;  %s331_s28 = sshll.u32 %s2271_s27, 4  ;;  %s2411_s28 = int_to_ptr.vmem [resolvable:$true] %s331_s28 }
  0x1a   : > { %s2784_s4 = sld [smem:[#allocation24_spill]] }
  0x1b   : > { %p2407_p11 = pnand %p1948_p9, %p2765_p1 }
  0x1d   : > { %p2060_p13 = pneg %p2407_p11 }
  0x20   : > { %s2058_s11 = scalar_lea.hbm %s2784_s4, 512 }
  0x21   : > { %p2059_p12 = scmp.ne.s32.totalorder %s2784_s4, %s2058_s11  ;;  %p2065_p5 = scmp.lt.u32.totalorder %s2058_s11, %s2784_s4 }
  0x23   : > { %p2061_p0 = pnand %p2060_p13, %p2059_p12 }
  0x25   : > { %p2062_p3 = pneg %p2061_p0 }
  0x27   : > { %p2067_p7 = pnand %p2065_p5, %p2062_p3 }
  0x29   : > { %2070 = shalt.err (!%p2067_p7)
}
  0x2a   : > { %s2071_s27 = scalar_lea.vmem %s2400_s25, 512  ;;  %p2079_p2 = scmp.lt.s32.totalorder %s2400_s25, %s2400_s25 }
  0x2b   : > { %p2072_p9 = scmp.ne.s32.totalorder %s2400_s25, %s2071_s27  ;;  %p2080_p12 = scmp.lt.s32.totalorder %s2071_s27, %s2071_s27 }
  0x2d   : > { %p2074_p10 = pnand %p2072_p9, %p2060_p13  ;;  %p2081_p0 = por %p2080_p12, %p2079_p2 }
  0x2f   : > { %p2075_p1 = pneg %p2074_p10 }
  0x31   : > { %p2082_p6 = pnand %p2081_p0, %p2075_p1 }
  0x33   : > { %2085 = shalt.err (!%p2082_p6)
}
  0x34   : > { %s2272_s22 = smov 128   ;;  %s2273_s29 = smov 8  }
  0x35   : > { %1951 = dma.hbm_to_vmem [thread:$0]  (!%p2407_p11), %s2784_s4, 512, %s2400_s25, [#allocation9], %s2272_s22, %s2272_s22, %s2273_s29  }
  0x36   : > { %s2785_s6 = sld [smem:[#allocation25_spill]] }
  0x3c   : > { %s2086_s24 = scalar_lea.hbm %s2785_s6, 512 }
  0x3d   : > { %p2087_p2 = scmp.ne.s32.totalorder %s2785_s6, %s2086_s24  ;;  %p2093_p10 = scmp.lt.u32.totalorder %s2086_s24, %s2785_s6 }
  0x3f   : > { %p2089_p1 = pnand %p2087_p2, %p2060_p13 }
  0x41   : > { %p2090_p6 = pneg %p2089_p1 }
  0x43   : > { %p2095_p3 = pnand %p2093_p10, %p2090_p6 }
  0x45   : > { %2098 = shalt.err (!%p2095_p3)
}
  0x46   : > { %s2099_s25 = scalar_lea.vmem %s2411_s28, 512  ;;  %p2107_p12 = scmp.lt.s32.totalorder %s2411_s28, %s2411_s28 }
  0x47   : > { %p2100_p5 = scmp.ne.s32.totalorder %s2411_s28, %s2099_s25  ;;  %p2108_p0 = scmp.lt.s32.totalorder %s2099_s25, %s2099_s25 }
  0x49   : > { %p2102_p7 = pnand %p2100_p5, %p2060_p13  ;;  %p2109_p2 = por %p2108_p0, %p2107_p12 }
  0x4b   : > { %p2103_p9 = pneg %p2102_p7 }
  0x4d   : > { %p2110_p1 = pnand %p2109_p2, %p2103_p9 }
  0x4f   : > { %2113 = shalt.err (!%p2110_p1)
}
  0x50   : > { %1954 = dma.hbm_to_vmem [thread:$0]  (!%p2407_p11), %s2785_s6, 512, %s2411_s28, [#allocation12], %s2272_s22, %s2272_s22, %s2273_s29  }
  0x51   : > { %s42_s13 = sadd.s32 1, %s2264_s17  ;;  %s49_s30 = sadd.s32 1, %s2256_s15 }
  0x52   : > { %p44_p13 = scmp.ge.s32.totalorder %s42_s13, 2  ;;  %p56_p6 = scmp.ne.s32.totalorder %s2256_s15, %s2252_s14 }
  0x53   : > { %p57_p10 = scmp.eq.s32.totalorder %s2268_s18, 0  ;;  %p1968_p3 = scmp.lt.s32.totalorder %s2268_s18, 2 }
  0x54   : > { %s2811_s13 = smov (%p44_p13, %s42_s13), 0  ;;  %p2787_p7 = scmp.eq.s32.totalorder %s2377_s19, 1 }
  0x55   : > { %2786 = sst [smem:[#allocation22_spill]] %s2811_s13  ;;  %p58_p5 = por %p57_p10, %p56_p6 }
  0x56   : > { %p2475_p9 = por %p2787_p7, %p56_p6  ;;  %s46_s11 = ssub.s32 %s2264_s17, %s2811_s13 }
  0x57   : > { %s354_s12 = sand.u32 1, %s2256_s15   ;;  %p47_p12 = scmp.eq.s32.totalorder %s46_s11, 0 }
  0x58   : > { %s2788_s26 = scalar_select %p2475_p9, 1, 0 }
  0x59   : > { %s2482_s28 = sshll.u32 %s354_s12, 3  ;;  %s1792_s22 = sshll.u32 %s2264_s17, 7 }
  0x5a   : > { %s2486_s29 = scalar_select %p47_p12, %s2256_s15, %s49_s30  }
  0x5b   : > { %s2491_s27 = scalar_lea.hbm %s2753_s0, %s1792_s22  ;;  %s358_s25 = scalar_lea.vmem [#allocation5], %s2482_s28 }
  0x5c   : > { %2789 = sst [smem:[#allocation23_spill]] %s2486_s29  ;;  %s365_s9 = sshll.u32 %s358_s25, 4  ;;  %s2500_s9 = int_to_ptr.vmem [resolvable:$true] %s365_s9 }
  0x5d   : > { %p2496_p11 = pnand %p1968_p3, %p58_p5  ;;  %s2505_s20 = scalar_lea.hbm %s2754_s1, %s1792_s22 }
  0x5e   : > { %s355_s24 = scalar_lea.sflag [#allocation6], %s354_s12  ;;  %s2114_s4 = scalar_lea.hbm %s2491_s27, 128 }
  0x5f   : > { %p2115_p0 = scmp.ne.s32.totalorder %s2491_s27, %s2114_s4  ;;  %p2116_p2 = pneg %p2496_p11 }
  0x60   : > { %s2119_s13 = scalar_lea.hbm %s2753_s0, 256  ;;  %p2120_p6 = scmp.lt.u32.totalorder %s2491_s27, %s2753_s0 }
  0x61   : > { %p2117_p1 = pnand %p2116_p2, %p2115_p0  ;;  %p2121_p10 = scmp.lt.u32.totalorder %s2119_s13, %s2114_s4 }
  0x62   : > { %p2123_p5 = scmp.lt.u32.totalorder %s2114_s4, %s2491_s27 }
  0x63   : > { %p2118_p13 = pneg %p2117_p1  ;;  %p2122_p3 = por %p2121_p10, %p2120_p6 }
  0x65   : > { %p2124_p7 = por %p2123_p5, %p2122_p3 }
  0x67   : > { %p2125_p12 = pnand %p2124_p7, %p2118_p13 }
  0x69   : > { %2128 = shalt.err (!%p2125_p12)
}
  0x6a   : > { %s2129_s12 = scalar_lea.vmem %s2500_s9, 128  ;;  %s2274_s6 = smov [#allocation5]  }
  0x6b   : > { %p2130_p0 = scmp.ne.s32.totalorder %s2500_s9, %s2129_s12  ;;  %s2134_s22 = sshll.u32 %s2274_s6, 4  ;;  %s2135_s22 = int_to_ptr.vmem [resolvable:$false] %s2134_s22 }
  0x6c   : > { %s2136_s17 = scalar_lea.vmem %s2135_s22, 256  ;;  %p2137_p4 = scmp.lt.s32.totalorder %s2500_s9, %s2135_s22 }
  0x6d   : > { %p2132_p1 = pnand %p2130_p0, %p2116_p2  ;;  %p2138_p6 = scmp.lt.s32.totalorder %s2136_s17, %s2129_s12 }
  0x6f   : > { %p2133_p9 = pneg %p2132_p1  ;;  %p2139_p10 = por %p2138_p6, %p2137_p4 }
  0x71   : > { %p2140_p3 = pnand %p2139_p10, %p2133_p9 }
  0x73   : > { %2143 = shalt.err (!%p2140_p3)
}
  0x74   : > { %1958 = dma.hbm_to_vmem [thread:$0]  (!%p2496_p11), %s2491_s27, 128, %s2500_s9, %s355_s24  }
  0x75   : > { %s372_s4 = sand.u32 1, %s2268_s18   ;;  %s376_s13 = scalar_lea.vmem [#allocation8], %s2482_s28 }
  0x76   : > { %s384_s29 = sshll.u32 %s376_s13, 4  ;;  %s373_s30 = scalar_lea.sflag [#allocation9], %s372_s4  ;;  %s385_s29 = int_to_ptr.vmem [resolvable:$true] %s384_s29 }
  0x77   : > { %s2144_s11 = scalar_lea.hbm %s2505_s20, 128  ;;  %s2149_s6 = scalar_lea.hbm %s2754_s1, 256 }
  0x78   : > { %p2145_p4 = scmp.ne.s32.totalorder %s2505_s20, %s2144_s11  ;;  %p2150_p5 = scmp.lt.u32.totalorder %s2505_s20, %s2754_s1 }
  0x79   : > { %p2151_p7 = scmp.lt.u32.totalorder %s2149_s6, %s2144_s11  ;;  %p2153_p0 = scmp.lt.u32.totalorder %s2144_s11, %s2505_s20 }
  0x7a   : > { %p2147_p9 = pnand %p2145_p4, %p2116_p2 }
  0x7b   : > { %p2152_p12 = por %p2151_p7, %p2150_p5 }
  0x7c   : > { %p2148_p13 = pneg %p2147_p9 }
  0x7d   : > { %p2154_p1 = por %p2153_p0, %p2152_p12 }
  0x7f   : > { %p2155_p6 = pnand %p2154_p1, %p2148_p13 }
  0x81   : > { %2158 = shalt.err (!%p2155_p6)
}
  0x82   : > { %s2159_s28 = scalar_lea.vmem %s385_s29, 128  ;;  %s2275_s27 = smov [#allocation8]  }
  0x83   : > { %p2160_p10 = scmp.ne.s32.totalorder %s385_s29, %s2159_s28  ;;  %s2164_s9 = sshll.u32 %s2275_s27, 4  ;;  %s2165_s9 = int_to_ptr.vmem [resolvable:$false] %s2164_s9 }
  0x84   : > { %s2166_s24 = scalar_lea.vmem %s2165_s9, 256  ;;  %p2167_p9 = scmp.lt.s32.totalorder %s385_s29, %s2165_s9 }
  0x85   : > { %p2162_p3 = pnand %p2160_p10, %p2116_p2  ;;  %p2168_p8 = scmp.lt.s32.totalorder %s2166_s24, %s2159_s28 }
  0x87   : > { %p2163_p4 = pneg %p2162_p3  ;;  %p2169_p5 = por %p2168_p8, %p2167_p9 }
  0x89   : > { %p2170_p7 = pnand %p2169_p5, %p2163_p4 }
  0x8b   : > { %2173 = shalt.err (!%p2170_p7)
}
  0x8c   : > { %1961 = dma.hbm_to_vmem [thread:$0]  (!%p2496_p11), %s2505_s20, 128, %s385_s29, %s373_s30  }
  0x8d   : > { %p2791_p13 = scmp.ne.s32.totalorder %s2782_s23, 0 }
  0x8e   : > { %s2556_s4 = sand.u32 (!%p2791_p13), 1, %s2252_s14   ;;  %p2792_p8 = scmp.ne.s32.totalorder (!%p2791_p13), %s2779_s21, 0 }
  0x8f   : > { %393 = sbr.rel (%p2791_p13) target bundleno = 2122 (0x84a), region = 60  ;;  %s2559_s13 = sshll.u32 (!%p2791_p13), %s2556_s4, 3 }
  0x90   : > { %s396_s11 = scalar_lea.sflag (!%p2791_p13), [#allocation6], %s2556_s4  ;;  %s399_s25 = scalar_lea.vmem (!%p2791_p13), [#allocation5], %s2559_s13 }
  0x96   : > { %2227 = dma.done.wait (%p2792_p8), %s396_s11, 128  }
  0x97   : > { %2229 = vsyncadd (%p2792_p8), %s396_s11, 4294967168  ;;  %s404_s23 = sand.u32 1, %s2377_s19   ;;  %s408_s20 = scalar_lea.vmem [#allocation8], %s2559_s13 }
  0x98   : > { %s405_s10 = scalar_lea.sflag [#allocation9], %s404_s23 }
  0x99   : > { %2231 = dma.done.wait (%p2792_p8), %s405_s10, 128  }
  0x9a   : > { %2233 = vsyncadd (%p2792_p8), %s405_s10, 4294967168  ;;  %p2793_p11 = scmp.eq.s32.totalorder %s2377_s19, 0 }
  0x9c   : > { %2235 = dma.done.wait (%p2793_p11), [#allocation9], 512   ;;  %p2794_p2 = pmov %p2793_p11 }
  0x9e   : > { %2237 = vsyncadd (%p2794_p2), [#allocation9], 4294966784  ;;  %p2795_p12 = pmov %p2794_p2 }
  0x9f   : > { %p2796_p0 = pmov %p2794_p2 }
  0xa0   : > { %2239 = dma.done.wait (%p2795_p12), [#allocation12], 512  }
  0xa1   : > { %2241 = vsyncadd (%p2796_p0), [#allocation12], 4294966784  ;;  %vm465_vm0 = vcmask 261120   ;;  %v464_v0 = vld [vmem:[%s399_s25] sm:$0xff]  ;;  %v496_v9 = vld [vmem:[#allocation10 + $0x10] sm:$0xff]  ;;  %v2276_v10 = vmov 0.0|0.0  }
  0xa2   : > { %v466_v1 = vsel %vm465_vm0, %v464_v0, 0.0  ;;  %v494_v7 = vld [vmem:[#allocation10] sm:$0xff]  ;;  %v495_v8 = vld [vmem:[#allocation10 + $0x8] sm:$0xff]  ;;  %1928 = vmatprep.subr.bf16.mxu0 %v2276_v10  ;;  %v497_v12 = vld [vmem:[#allocation10 + $0x18] sm:$0xff]  ;;  %vm2277_vm1 = vmmov 0   ;;  %v2278_v13 = vmov 0.0  }
  0xa3   : > { %467 = vadd.xlane.f32.xlu0 %v466_v1  ;;  %v1929_v11 = vpack.c.bf16 %v495_v8, %v494_v7  ;;  %1865 = vmatprep.mubr.msk.f32.mxu0 %vm2277_vm1, %v2278_v13  ;;  %v1932_v14 = vpack.c.bf16 %v497_v12, %v496_v9  ;;  %v1801_v19 = vld [vmem:[%s2755_s2] ss:$0 sm:$0xff]  ;;  %vm582_vm2 = vcmask 64512   ;;  %s2279_s22 = smov 80   ;;  %s2280_s17 = smov 96  }
  0xa4   : > { %1868 = vmatprep.subr.mxu1 %v2278_v13  ;;  %1870 = vmatprep.mubr.msk.f32.mxu1 %vm2277_vm1, %v2278_v13  ;;  %v1802_v21 = vld [vmem:[%s2756_s3] ss:$0 sm:$0xff]  ;;  %s2281_s28 = smov 88   ;;  %s2282_s27 = smov 120  }
  0xa5   : > { %1930 = vmatpush3.bf16.msra.mxu0 %v1929_v11  ;;  %v1803_v24 = vld [vmem:[%s2758_s5] ss:$0 sm:$0xff]  ;;  %s2283_s9 = smov 72   ;;  %s2284_s24 = smov 112  }
  0xa6   : > { %1931 = vmatprep.subr.bf16.mxu0 %v2276_v10  ;;  %s2285_s11 = smov 104   ;;  %s2286_s25 = smov 64  }
  0xa7   : > { %s2287_s23 = smov 48   ;;  %s2288_s10 = smov 40  }
  0xa8   : > { %s2289_s19 = smov 56   ;;  %p2799_p6 = scmp.ne.s32.totalorder %s2788_s26, 0 }
  0xa9   : > { %1933 = vmatpush3.bf16.msra.mxu0 %v1932_v14 }
  0xaa   : > { %1878 = vmatprep.subr.mxu0 %v2278_v13 }
 0x130   : > { %v468_v2 = vpop.xlane.xlu0 %467 }
 0x131   : > { %v470_v3 = vmul.f32 0.03125, %v468_v2 }
 0x133   : > { %v471_v4 = vsub.f32 %v464_v0, %v470_v3 }
 0x135   : > { %v472_v5 = vmul.f32 %v471_v4, %v471_v4 }
 0x137   : > { %v473_v6 = vsel %vm465_vm0, %v472_v5, 0.0 }
 0x138   : > { %474 = vadd.xlane.f32.xlu0 %v473_v6 }
 0x1c5   : > { %v475_v15 = vpop.xlane.xlu0 %474 }
 0x1c6   : > { %v476_v16 = vmul.f32 0.03125, %v475_v15 }
 0x1c8   : > { %v477_v17 = vadd.f32 1e-05, %v476_v16 }
 0x1ca   : > { %2038 = vrsqrt.f32 %v477_v17 }
 0x1d4   : > { %v2039_v18 = vpop.eup %2038 }
 0x1d5   : > { %v479_v20 = vmul.f32 %v2039_v18, %v471_v4 }
 0x1d7   : > { %v486_v22 = vmul.f32 %v1801_v19, %v479_v20 }
 0x1d9   : > { %v493_v23 = vadd.f32 %v1802_v21, %v486_v22 }
 0x1db   : > { %1866 = vmatmul.mubr.msk.f32.vlgmr.msra.gmra.mrb[0].mxu0 %vm465_vm0, %v493_v23 }
 0x1dc   : > { %1880 = vmatprep.mubr.msk.f32.mxu0 %vm2277_vm1, %v2278_v13 }
 0x2ae   : > { %v574_v25 = vpop.f32.mrb[0].mxu0 }
 0x2af   : > { %v2601_v26 = vadd.f32 %v1803_v24, %v574_v25  ;;  %v1867_v27 = vpop.f32.mrb[1].mxu0 }
 0x2b1   : > { %604 = vrot.lane.b32.xlu0 %v2601_v26, %s2279_s22  ;;  %579 = vrot.lane.b32.xlu1 %v2601_v26, %s2280_s17  ;;  %588 = vst.msk [vmem:[#allocation2] sm:$0xff] %vm582_vm2, %v2601_v26  ;;  %s2797_s22 = sld [smem:[#allocation26_spill]]  ;;  %s1825_s17 = sshll.u32 %s2260_s16, 7 }
 0x2b2   : > { %s2290_s16 = smov [#allocation13]  }
 0x2b5   : > { %589 = vrot.lane.b32.xlu1 %v2601_v26, %s2281_s28  ;;  %s457_s28 = scalar_lea.vmem [#allocation13], %s2559_s13  ;;  %s2178_s13 = sshll.u32 %s2290_s16, 4  ;;  %s2179_s13 = int_to_ptr.vmem [resolvable:$false] %s2178_s13 }
 0x2b8   : > { %v636_v34 = vld [vmem:[#allocation2] sm:$0xff] }
 0x2b9   : > { %599 = vrot.lane.b32.xlu1 %v2601_v26, %s2282_s27  ;;  %s1661_s27 = sshll.u32 %s457_s28, 4  ;;  %s2705_s27 = int_to_ptr.vmem [resolvable:$true] %s1661_s27 }
 0x2ba   : > { %p2181_p4 = scmp.lt.s32.totalorder %s2705_s27, %s2179_s13 }
 0x2bd   : > { %619 = vrot.lane.b32.xlu1 %v2601_v26, %s2283_s9 }
 0x2c1   : > { %614 = vrot.lane.b32.xlu1 %v2601_v26, %s2284_s24 }
 0x2c5   : > { %629 = vrot.lane.b32.xlu1 %v2601_v26, %s2285_s11  ;;  %s2798_s11 = sld [smem:[#allocation27_spill]] }
 0x323   : > { %v605_v28 = vpop.permute.xlu0 %604  ;;  %v580_v29 = vpop.permute.xlu1 %579 }
 0x324   : > { %608 = vst.msk [vmem:[#allocation3 + $0x10] sm:$0xff] %vm582_vm2, %v605_v28  ;;  %583 = vst.msk [vmem:[#allocation3] sm:$0xff] %vm582_vm2, %v580_v29 }
 0x327   : > { %v590_v30 = vpop.permute.xlu1 %589 }
 0x328   : > { %593 = vst.msk [vmem:[#allocation3 + $0x8] sm:$0xff] %vm582_vm2, %v590_v30 }
 0x32b   : > { %v600_v31 = vpop.permute.xlu1 %599  ;;  %v640_v32 = vld [vmem:[#allocation3] sm:$0xff]  ;;  %v642_v33 = vld [vmem:[#allocation3 + $0x10] sm:$0xff] }
 0x32c   : > { %603 = vst.msk [vmem:[#allocation2 + $0x8] sm:$0xff] %vm582_vm2, %v600_v31  ;;  %1869 = vmatpush3.xpose.msk.msra.mxu1 %vm582_vm2, %v640_v32  ;;  %1879 = vmatpush3.xpose.msk.msra.mxu0 %vm582_vm2, %v642_v33 }
 0x32d   : > { %1873 = vmatprep.subr.mxu1 %v2278_v13  ;;  %1888 = vmatprep.subr.mxu0 %v2278_v13 }
 0x32f   : > { %v620_v35 = vpop.permute.xlu1 %619  ;;  %1871 = vmatmul.mubr.msk.f32.vlgmr.msra.gmra.mrb[0].mxu1 %vm582_vm2, %v636_v34  ;;  %v641_v36 = vld [vmem:[#allocation3 + $0x8] sm:$0xff] }
 0x330   : > { %623 = vst.msk [vmem:[#allocation3 + $0x18] sm:$0xff] %vm582_vm2, %v620_v35  ;;  %1874 = vmatpush3.xpose.msk.msra.mxu1 %vm582_vm2, %v641_v36  ;;  %1875 = vmatprep.mubr.msk.f32.mxu1 %vm2277_vm1, %v2278_v13 }
 0x331   : > { %1883 = vmatprep.subr.mxu1 %v2278_v13 }
 0x333   : > { %v615_v37 = vpop.permute.xlu1 %614  ;;  %v637_v38 = vld [vmem:[#allocation2 + $0x8] sm:$0xff] }
 0x334   : > { %618 = vst.msk [vmem:[#allocation2 + $0x10] sm:$0xff] %vm582_vm2, %v615_v37  ;;  %1876 = vmatmul.mubr.msk.f32.vlgmr.msra.gmra.mrb[2].mxu1 %vm582_vm2, %v637_v38 }
 0x335   : > { %1885 = vmatprep.mubr.msk.f32.mxu1 %vm2277_vm1, %v2278_v13 }
 0x337   : > { %v630_v39 = vpop.permute.xlu1 %629  ;;  %v643_v40 = vld [vmem:[#allocation3 + $0x18] sm:$0xff] }
 0x338   : > { %633 = vst.msk [vmem:[#allocation2 + $0x18] sm:$0xff] %vm582_vm2, %v630_v39  ;;  %1884 = vmatpush3.xpose.msk.msra.mxu1 %vm582_vm2, %v643_v40 }
 0x339   : > { %1893 = vmatprep.subr.mxu1 %v2278_v13 }
 0x33b   : > { %v638_v41 = vld [vmem:[#allocation2 + $0x10] sm:$0xff] }
 0x33c   : > { %1881 = vmatmul.mubr.msk.f32.vlgmr.msra.gmra.mrb[2].mxu0 %vm582_vm2, %v638_v41 }
 0x33d   : > { %1890 = vmatprep.mubr.msk.f32.mxu0 %vm2277_vm1, %v2278_v13 }
 0x33f   : > { %v639_v42 = vld [vmem:[#allocation2 + $0x18] sm:$0xff] }
 0x340   : > { %1886 = vmatmul.mubr.msk.f32.vlgmr.msra.gmra.mrb[4].mxu1 %vm582_vm2, %v639_v42 }
 0x341   : > { %1895 = vmatprep.mubr.msk.f32.mxu1 %vm2277_vm1, %v2278_v13 }
 0x402   : > { %v721_v43 = vpop.f32.mrb[0].mxu1 }
 0x403   : > { %v1872_v44 = vpop.f32.mrb[1].mxu1  ;;  %v953_v45 = vsel %vm582_vm2, %v721_v43, -inf }
 0x404   : > { %954 = vmax.xlane.f32.xlu1 %v953_v45  ;;  %v1301_v44 = vld [vmem:[#allocation11] sm:$0xff]  ;;  %v1302_v45 = vld [vmem:[#allocation11 + $0x8] sm:$0xff] }
 0x407   : > { %v797_v46 = vpop.f32.mrb[2].mxu1 }
 0x408   : > { %v1877_v47 = vpop.f32.mrb[3].mxu1  ;;  %v956_v48 = vsel %vm582_vm2, %v797_v46, -inf }
 0x409   : > { %957 = vmax.xlane.f32.xlu0 %v956_v48 }
 0x40f   : > { %v873_v49 = vpop.f32.mrb[2].mxu0 }
 0x410   : > { %v1882_v50 = vpop.f32.mrb[3].mxu0  ;;  %v959_v51 = vsel %vm582_vm2, %v873_v49, -inf }
 0x411   : > { %960 = vmax.xlane.f32.xlu1 %v959_v51 }
 0x413   : > { %v949_v52 = vpop.f32.mrb[4].mxu1 }
 0x414   : > { %v1887_v53 = vpop.f32.mrb[5].mxu1  ;;  %v962_v54 = vsel %vm582_vm2, %v949_v52, -inf }
 0x415   : > { %963 = vmax.xlane.f32.xlu0 %v962_v54 }
 0x422   : > { %584 = vrot.lane.b32.xlu1 %v2601_v26, %s2286_s25  ;;  %s2703_s25 = scalar_lea.hbm %s2798_s11, %s1825_s17 }
 0x491   : > { %v955_v55 = vpop.xlane.xlu1 %954 }
 0x492   : > { %v965_v56 = vsub.f32 %v721_v43, %v955_v55 }
 0x494   : > { %v969_v57 = vmul.f32 1.442695, %v965_v56 }
 0x496   : > { %2040 = vpow2.f32 %v969_v57  ;;  %v958_v58 = vpop.xlane.xlu0 %957 }
 0x497   : > { %v966_v59 = vsub.f32 %v797_v46, %v958_v58  ;;  %v1303_v46 = vld [vmem:[#allocation11 + $0x10] sm:$0xff] }
 0x499   : > { %v971_v60 = vmul.f32 1.442695, %v966_v59 }
 0x49b   : > { %2042 = vpow2.f32 %v971_v60 }
 0x49e   : > { %v961_v61 = vpop.xlane.xlu1 %960 }
 0x49f   : > { %v967_v62 = vsub.f32 %v873_v49, %v961_v61  ;;  %v1304_v49 = vld [vmem:[#allocation11 + $0x18] sm:$0xff] }
 0x4a0   : > { %v2041_v63 = vpop.eup %2040 }
 0x4a1   : > { %v973_v0 = vmul.f32 1.442695, %v967_v62  ;;  %v977_v1 = vsel %vm582_vm2, %v2041_v63, 0.0 }
 0x4a2   : > { %v964_v2 = vpop.xlane.xlu0 %963  ;;  %978 = vadd.xlane.f32.xlu1 %v977_v1  ;;  %v585_v3 = vpop.permute.xlu1 %584 }
 0x4a3   : > { %2044 = vpow2.f32 %v973_v0  ;;  %v968_v4 = vsub.f32 %v949_v52, %v964_v2  ;;  %587 = vst.msk [vmem:[#allocation4] sm:$0xff] %vm582_vm2, %v585_v3 }
 0x4a5   : > { %v2043_v5 = vpop.eup %2042  ;;  %v975_v6 = vmul.f32 1.442695, %v968_v4  ;;  %v1821_v4 = vld [vmem:[%s2760_s7] ss:$0 sm:$0xff] }
 0x4a6   : > { %v980_v7 = vsel %vm582_vm2, %v2043_v5, 0.0 }
 0x4a7   : > { %2046 = vpow2.f32 %v975_v6  ;;  %981 = vadd.xlane.f32.xlu0 %v980_v7  ;;  %v1613_v7 = vld [vmem:[%s408_s20] sm:$0xff] }
 0x4aa   : > { %v644_v8 = vld [vmem:[#allocation4] sm:$0xff] }
 0x4ab   : > { %1889 = vmatpush3.msra.mxu0 %v644_v8 }
 0x4ac   : > { %1898 = vmatprep.subr.mxu0 %v2278_v13 }
 0x4ad   : > { %v2045_v9 = vpop.eup %2044 }
 0x4ae   : > { %v983_v10 = vsel %vm582_vm2, %v2045_v9, 0.0 }
 0x4af   : > { %984 = vadd.xlane.f32.xlu1 %v983_v10 }
 0x4b1   : > { %v2047_v11 = vpop.eup %2046 }
 0x4b2   : > { %v986_v12 = vsel %vm582_vm2, %v2047_v11, 0.0 }
 0x4b3   : > { %987 = vadd.xlane.f32.xlu0 %v986_v12 }
 0x4c0   : > { %609 = vrot.lane.b32.xlu1 %v2601_v26, %s2287_s23  ;;  %s1647_s23 = scalar_lea.sflag [#allocation7], %s2556_s4 }
 0x4c4   : > { %624 = vrot.lane.b32.xlu1 %v2601_v26, %s2288_s10  ;;  %s2174_s10 = scalar_lea.vmem %s2705_s27, 128 }
 0x4c5   : > { %p2175_p1 = scmp.ne.s32.totalorder %s2705_s27, %s2174_s10 }
 0x4c7   : > { %p2176_p10 = pnand %p2175_p1, %p2799_p6 }
 0x4c9   : > { %594 = vrot.lane.b32.xlu0 %v2601_v26, %s2289_s19  ;;  %p2177_p3 = pneg %p2176_p10  ;;  %s2180_s19 = scalar_lea.vmem %s2179_s13, 256 }
 0x4ca   : > { %p2182_p9 = scmp.lt.s32.totalorder %s2180_s19, %s2174_s10 }
 0x4cc   : > { %p2183_p5 = por %p2182_p9, %p2181_p4 }
 0x4ce   : > { %p2184_p7 = pnand %p2183_p5, %p2177_p3 }
 0x52f   : > { %v979_v14 = vpop.xlane.xlu1 %978 }
 0x530   : > { %2048 = vrcp.f32 %v979_v14 }
 0x534   : > { %v982_v15 = vpop.xlane.xlu0 %981 }
 0x535   : > { %2050 = vrcp.f32 %v982_v15 }
 0x53a   : > { %v2049_v16 = vpop.eup %2048 }
 0x53b   : > { %v993_v17 = vmul.f32 %v2049_v16, %v979_v14 }
 0x53c   : > { %v985_v18 = vpop.xlane.xlu1 %984 }
 0x53d   : > { %v997_v19 = vsub.f32 2.0, %v993_v17  ;;  %2052 = vrcp.f32 %v985_v18 }
 0x53f   : > { %v2051_v20 = vpop.eup %2050  ;;  %v1001_v21 = vmul.f32 %v2049_v16, %v997_v19 }
 0x540   : > { %v994_v22 = vmul.f32 %v2051_v20, %v982_v15  ;;  %v988_v23 = vpop.xlane.xlu0 %987  ;;  %v610_v24 = vpop.permute.xlu1 %609 }
 0x541   : > { %v1005_v25 = vmul.f32 %v2041_v63, %v1001_v21  ;;  %2054 = vrcp.f32 %v988_v23  ;;  %613 = vst.msk [vmem:[#allocation4 + $0x10] sm:$0xff] %vm582_vm2, %v610_v24  ;;  %v1822_v21 = vld [vmem:[%s2761_s8] ss:$0 sm:$0xff] }
 0x542   : > { %v998_v26 = vsub.f32 2.0, %v994_v22 }
 0x543   : > { %1891 = vmatmul.mubr.msk.f32.vlgmr.msra.gmra.mrb[4].mxu0 %vm582_vm2, %v1005_v25 }
 0x544   : > { %v595_v27 = vpop.permute.xlu0 %594  ;;  %v625_v28 = vpop.permute.xlu1 %624  ;;  %1900 = vmatprep.mubr.msk.f32.mxu0 %vm2277_vm1, %v2278_v13  ;;  %v1002_v30 = vmul.f32 %v2051_v20, %v998_v26 }
 0x545   : > { %598 = vst.msk [vmem:[#allocation4 + $0x8] sm:$0xff] %vm582_vm2, %v595_v27  ;;  %628 = vst.msk [vmem:[#allocation4 + $0x18] sm:$0xff] %vm582_vm2, %v625_v28 }
 0x546   : > { %v1006_v35 = vmul.f32 %v2043_v5, %v1002_v30 }
 0x547   : > { %v2053_v29 = vpop.eup %2052 }
 0x548   : > { %v995_v31 = vmul.f32 %v2053_v29, %v985_v18  ;;  %v646_v32 = vld [vmem:[#allocation4 + $0x10] sm:$0xff] }
 0x549   : > { %1899 = vmatpush3.msra.mxu0 %v646_v32 }
 0x54a   : > { %v999_v33 = vsub.f32 2.0, %v995_v31  ;;  %1908 = vmatprep.subr.mxu0 %v2278_v13 }
 0x54b   : > { %v2055_v34 = vpop.eup %2054 }
 0x54c   : > { %v1003_v36 = vmul.f32 %v2053_v29, %v999_v33  ;;  %v996_v37 = vmul.f32 %v2055_v34, %v988_v23  ;;  %v645_v38 = vld [vmem:[#allocation4 + $0x8] sm:$0xff]  ;;  %v647_v41 = vld [vmem:[#allocation4 + $0x18] sm:$0xff]  ;;  %v1823_v23 = vld [vmem:[%s2797_s22] ss:$0 sm:$0xff] }
 0x54d   : > { %1894 = vmatpush3.msra.mxu1 %v645_v38 }
 0x54e   : > { %v1007_v39 = vmul.f32 %v2045_v9, %v1003_v36  ;;  %v1000_v40 = vsub.f32 2.0, %v996_v37  ;;  %1896 = vmatmul.mubr.msk.f32.vlgmr.msra.gmra.mrb[6].mxu1 %vm582_vm2, %v1006_v35  ;;  %1903 = vmatprep.subr.mxu1 %v2278_v13 }
 0x54f   : > { %1904 = vmatpush3.msra.mxu1 %v647_v41  ;;  %1905 = vmatprep.mubr.msk.f32.mxu1 %vm2277_vm1, %v2278_v13 }
 0x550   : > { %v1004_v42 = vmul.f32 %v2055_v34, %v1000_v40  ;;  %1901 = vmatmul.mubr.msk.f32.vlgmr.msra.gmra.mrb[6].mxu0 %vm582_vm2, %v1007_v39  ;;  %1913 = vmatprep.subr.mxu1 %v2278_v13 }
 0x551   : > { %1910 = vmatprep.mubr.msk.f32.mxu0 %vm2277_vm1, %v2278_v13  ;;  %1909 = vmatpush3.msra.mxu0 %v1301_v44 }
 0x552   : > { %v1008_v43 = vmul.f32 %v2047_v11, %v1004_v42  ;;  %1918 = vmatprep.subr.mxu0 %v2278_v13 }
 0x554   : > { %1906 = vmatmul.mubr.msk.f32.vlgmr.msra.gmra.mrb[8].mxu1 %vm582_vm2, %v1008_v43 }
 0x555   : > { %1915 = vmatprep.mubr.msk.f32.mxu1 %vm2277_vm1, %v2278_v13  ;;  %1914 = vmatpush3.msra.mxu1 %v1302_v45 }
 0x556   : > { %1923 = vmatprep.subr.mxu1 %v2278_v13 }
 0x616   : > { %v1078_v47 = vpop.f32.mrb[4].mxu0 }
 0x617   : > { %v1892_v48 = vpop.f32.mrb[5].mxu0  ;;  %1911 = vmatmul.mubr.msk.f32.vlgmr.msra.gmra.mrb[8].mxu0 %vm582_vm2, %v1078_v47 }
 0x618   : > { %1919 = vmatpush3.msra.mxu0 %v1303_v46  ;;  %1920 = vmatprep.mubr.msk.f32.mxu0 %vm2277_vm1, %v2278_v13 }
 0x621   : > { %v1151_v50 = vpop.f32.mrb[6].mxu1 }
 0x622   : > { %v1897_v51 = vpop.f32.mrb[7].mxu1  ;;  %1916 = vmatmul.mubr.msk.f32.vlgmr.msra.gmra.mrb[10].mxu1 %vm582_vm2, %v1151_v50 }
 0x623   : > { %v1224_v52 = vpop.f32.mrb[6].mxu0  ;;  %1924 = vmatpush3.msra.mxu1 %v1304_v49  ;;  %1925 = vmatprep.mubr.msk.f32.mxu1 %vm2277_vm1, %v2278_v13 }
 0x624   : > { %v1902_v53 = vpop.f32.mrb[7].mxu0  ;;  %1921 = vmatmul.mubr.msk.f32.vlgmr.msra.gmra.mrb[10].mxu0 %vm582_vm2, %v1224_v52 }
 0x627   : > { %v1297_v54 = vpop.f32.mrb[8].mxu1 }
 0x628   : > { %v1907_v55 = vpop.f32.mrb[9].mxu1  ;;  %1926 = vmatmul.mubr.msk.f32.vlgmr.msra.gmra.mrb[12].mxu1 %vm582_vm2, %v1297_v54 }
 0x6ea   : > { %v1374_v56 = vpop.f32.mrb[8].mxu0 }
 0x6eb   : > { %v1912_v57 = vpop.f32.mrb[9].mxu0  ;;  %v1598_v59 = vsel %vm465_vm0, %v1374_v56, 0.0 }
 0x6f5   : > { %v1447_v58 = vpop.f32.mrb[10].mxu1 }
 0x6f6   : > { %v1599_v60 = vsel %vm465_vm0, %v1447_v58, 0.0  ;;  %v1917_v61 = vpop.f32.mrb[11].mxu1 }
 0x6f7   : > { %v1600_v62 = vadd.f32 %v1599_v60, %v1598_v59  ;;  %v1520_v63 = vpop.f32.mrb[10].mxu0 }
 0x6f8   : > { %v1601_v13 = vsel %vm465_vm0, %v1520_v63, 0.0  ;;  %v1922_v0 = vpop.f32.mrb[11].mxu0 }
 0x6f9   : > { %v1602_v1 = vadd.f32 %v1601_v13, %v1600_v62 }
 0x6fb   : > { %v1593_v2 = vpop.f32.mrb[12].mxu1 }
 0x6fc   : > { %v1603_v3 = vsel %vm465_vm0, %v1593_v2, 0.0  ;;  %v1927_v5 = vpop.f32.mrb[13].mxu1 }
 0x6fd   : > { %v1604_v6 = vadd.f32 %v1603_v3, %v1602_v1 }
 0x6ff   : > { %v1612_v8 = vadd.f32 %v1821_v4, %v1604_v6 }
 0x701   : > { %v1614_v9 = vadd.f32 %v1613_v7, %v1612_v8 }
 0x703   : > { %v1617_v10 = vsel %vm465_vm0, %v1614_v9, 0.0 }
 0x704   : > { %1618 = vadd.xlane.f32.xlu0 %v1617_v10 }
 0x791   : > { %v1619_v11 = vpop.xlane.xlu0 %1618 }
 0x792   : > { %v1621_v12 = vmul.f32 0.03125, %v1619_v11 }
 0x794   : > { %v1622_v14 = vsub.f32 %v1614_v9, %v1621_v12 }
 0x796   : > { %v1623_v15 = vmul.f32 %v1622_v14, %v1622_v14 }
 0x798   : > { %v1624_v16 = vsel %vm465_vm0, %v1623_v15, 0.0 }
 0x799   : > { %1625 = vadd.xlane.f32.xlu1 %v1624_v16 }
 0x826   : > { %v1626_v17 = vpop.xlane.xlu1 %1625 }
 0x827   : > { %v1627_v18 = vmul.f32 0.03125, %v1626_v17 }
 0x829   : > { %v1628_v19 = vadd.f32 1e-05, %v1627_v18 }
 0x82b   : > { %2056 = vrsqrt.f32 %v1628_v19 }
 0x835   : > { %v2057_v20 = vpop.eup %2056 }
 0x836   : > { %v1630_v22 = vmul.f32 %v2057_v20, %v1622_v14 }
 0x838   : > { %v1637_v24 = vmul.f32 %v1822_v21, %v1630_v22 }
 0x83a   : > { %v1644_v25 = vadd.f32 %v1823_v23, %v1637_v24 }
 0x83c   : > { %1645 = vst.msk [vmem:[%s457_s28] sm:$0xff] %vm465_vm0, %v1644_v25 }
 0x83d   : > { %2187 = shalt.err (!%p2184_p7)
}
 0x83e   : > { %s2188_s4 = scalar_lea.hbm %s2703_s25, 128  ;;  %s2192_s20 = scalar_lea.hbm %s2798_s11, 256 }
 0x83f   : > { %p2189_p13 = scmp.ne.s32.totalorder %s2703_s25, %s2188_s4  ;;  %p2193_p2 = scmp.lt.u32.totalorder %s2703_s25, %s2798_s11 }
 0x840   : > { %p2194_p12 = scmp.lt.u32.totalorder %s2192_s20, %s2188_s4  ;;  %p2196_p1 = scmp.lt.u32.totalorder %s2188_s4, %s2703_s25 }
 0x841   : > { %p2190_p8 = pnand %p2189_p13, %p2799_p6 }
 0x842   : > { %p2195_p0 = por %p2194_p12, %p2193_p2 }
 0x843   : > { %p2191_p11 = pneg %p2190_p8 }
 0x844   : > { %p2197_p10 = por %p2196_p1, %p2195_p0 }
 0x846   : > { %p2198_p3 = pnand %p2197_p10, %p2191_p11 }
 0x848   : > { %2201 = shalt.err (!%p2198_p3)
}
 0x849   : > { %1946 = dma.vmem_to_hbm [thread:$0]  (%p2799_p6), %s2705_s27, 128, %s2703_s25, %s1647_s23  }
 0x84a PF: > { %s2800_s6 = sld [smem:[#allocation19_spill]]  ;;  %s2801_s22 = sld [smem:[#allocation21_spill]] }
 0x84b   : > { %p2803_p9 = scmp.ge.s32.totalorder %s2268_s18, 2 }
 0x850   : > { %s1673_s17 = sand.u32 1, %s2800_s6   ;;  %p2802_p4 = scmp.ne.s32.totalorder %s2801_s22, 0 }
 0x851   : > { %s1674_s28 = scalar_lea.sflag [#allocation7], %s1673_s17 }
 0x852   : > { %p1963_p5 = pnand %p2803_p9, %p2802_p4 }
 0x854   : > { %2243 = dma.done.wait (!%p1963_p5), %s1674_s28, 128  }
 0x855   : > { %2245 = vsyncadd (!%p1963_p5), %s1674_s28, 4294967168  ;;  %s30_s18 = sadd.s32 1, %s2268_s18   ;;  %s2804_s26 = sld [smem:[#allocation23_spill]] }
 0x856   : > { %p27_p7 = scmp.ge.s32.totalorder %s30_s18, 4   ;;  %s2805_s16 = sld [smem:[#allocation20_spill]] }
 0x857   : > { %s2806_s17 = sld [smem:[#allocation22_spill]]  ;;  %s2807_s13 = smov %s2252_s14 }
 0x858   : > { %s2808_s14 = smov %s2256_s15  ;;  %29 = sbr.rel (!%p27_p7) target bundleno = 14 (0xe), region = 140 }
 0x85b   : > { %s2809_s15 = smov %s2804_s26 }
 0x85f   :  { %1679 = vsyncpa [#allocation6], 1 }
 0x860   :  { %1681 = vsyncpa [#allocation6 + $0x1], 1 }
 0x861   :  { %1682 = vsyncpa [#allocation9], 1 }
 0x862   :  { %1684 = vsyncpa [#allocation9 + $0x1], 1 }
 0x863   :  { %1685 = vsyncpa [#allocation12], 1 }
 0x864   :  { %1686 = vsyncpa [#allocation7], 1 }
 0x865   :  { %1688 = vsyncpa [#allocation7 + $0x1], 1 }

</bundles_post_ra>
